<compile_context>
chip_gen: v6e
topology: v6e:2x2x1
jax: 0.10.0
libtpu: 0.0.40
codegen_flags: <defaults>
</compile_context>

<pallas_src>
import functools

import jax
import jax.numpy as jnp
from jax.experimental import pallas as pl
from jax.experimental.pallas import tpu as pltpu


def _round_up(x, m):
    return ((x + m - 1) // m) * m


def _vmem_capacity_bytes():
    try:
        info = pltpu.get_tpu_info()
        cap = getattr(info, "vmem_capacity_bytes", None)
        if cap:
            return int(cap)
    except Exception:
        pass
    return 64 * 1024 * 1024          # conservative (v7x)


def _pick_row_tile(n_pad, num_k, vmem_cap):
    """Row tile for the streamed bf16 G blocks.

    * If the whole (num_k, n_pad, n_pad) bf16 G fits the generation's headroom
      (double-buffered), use tile_n = n_pad: the G index_map becomes constant and
      G is fetched from HBM exactly once for both layers.
    * Otherwise pick the largest multiple of 16 dividing n_pad that keeps one
      double-buffered G block under a generation-aware budget.
    """
    big_vmem = vmem_cap >= 96 * 1024 * 1024             # v5e / v6e (128 MiB VMEM)
    resident_budget = (32 if big_vmem else 12) * 1024 * 1024
    if 2 * num_k * n_pad * n_pad * 2 <= resident_budget:
        return n_pad
    stream_budget = (24 if big_vmem else 8) * 1024 * 1024
    cap_rows = stream_budget // (2 * 2 * num_k * n_pad)  # 2 buffers x 2 bytes/elem
    tn = min(n_pad, 1024 if big_vmem else 512, max(16, cap_rows))
    tn = max(16, (tn // 16) * 16)
    while n_pad % tn != 0:
        tn -= 16
    return tn


def _kstep_hgcn_kernel(x_ref, g_ref, w1_ref, b1_ref, a_ref, w2_ref, b2_ref,
                       out_ref, scores_ref,
                       h_scr, z_scr, zsum_scr,
                       *, num_k, n_pad, tile_n, num_t, inv_n):
    l = pl.program_id(0)            # layer index
    t = pl.program_id(1)            # node-row tile index

    # ---- per-layer init: zero the attention column sums and compute
    #      h = x_l @ W1 + b1 (bf16 MXU operands, f32 accumulation). ----
    @pl.when(t == 0)
    def _layer_init():
        zsum_scr[...] = jnp.zeros_like(zsum_scr)

        @pl.when(l == 0)
        def _from_input():
            h = jnp.dot(x_ref[...], w1_ref[0],
                        preferred_element_type=jnp.float32) + b1_ref[0]
            h_scr[...] = h.astype(h_scr.dtype)

        @pl.when(l != 0)
        def _from_carry():
            # out_ref has a constant index_map, so it stays VMEM-resident and holds
            # the previous layer's ReLU'd activations (no HBM round trip).
            h = jnp.dot(out_ref[...].astype(jnp.bfloat16), w1_ref[0],
                        preferred_element_type=jnp.float32) + b1_ref[0]
            h_scr[...] = h.astype(h_scr.dtype)

    # ---- K-step propagation for this row tile: z[k, rows] = G_k[rows, :] @ h. ----
    h_mat = h_scr[...]                                   # hoisted bf16 RHS
    for kk in range(num_k):
        z_tile = jnp.dot(g_ref[kk], h_mat,
                         preferred_element_type=jnp.float32)          # (tile_n, P) f32
        # Column sums accumulated in f32 (attention logits) before the bf16 store.
        zsum_scr[pl.ds(kk, 1), :] = (zsum_scr[pl.ds(kk, 1), :]
                                     + jnp.sum(z_tile, axis=0, keepdims=True))
        dst = pl.multiple_of(kk * n_pad + t * tile_n, tile_n)
        z_scr[pl.ds(dst, tile_n), :] = z_tile.astype(z_scr.dtype)

    # ---- After the last row tile of this layer: attention over K, tiled
    #      combine + W2 + bias + ReLU, write scores. ----
    @pl.when(t == num_t - 1)
    def _finalize_layer():
        a_row = a_ref[0]                                              # (1, P) f32

        # e_k = mean_n(z_k @ a) == (mean_n z_k) @ a ; inv_n uses the TRUE node
        # count (padded z rows are exactly zero).
        e_list = []
        for kk in range(num_k):
            zbar = zsum_scr[pl.ds(kk, 1), :] * inv_n                  # (1, P)
            e_list.append(jnp.sum(zbar * a_row, axis=1, keepdims=True))  # (1, 1)

        # Softmax over the K operators (all f32).
        m = e_list[0]
        for e in e_list[1:]:
            m = jnp.maximum(m, e)
        ex_list = [jnp.exp(e - m) for e in e_list]
        denom = ex_list[0]
        for v in ex_list[1:]:
            denom = denom + v
        inv_denom = pl.reciprocal(denom, approx=False)
        score_list = [v * inv_denom for v in ex_list]                 # K x (1, 1)

        w2 = w2_ref[0]                                                # (P, P) bf16
        b2 = b2_ref[0]                                                # (1, P) f32

        # Tiled combine + projection: bounds live data to one (tile_n, P) chunk.
        def chunk_body(c, carry):
            r0 = pl.multiple_of(c * tile_n, tile_n)
            comb = score_list[0] * z_scr[pl.ds(r0, tile_n), :].astype(jnp.float32)
            for kk in range(1, num_k):
                rk = pl.multiple_of(kk * n_pad + c * tile_n, tile_n)
                comb = comb + (score_list[kk]
                               * z_scr[pl.ds(rk, tile_n), :].astype(jnp.float32))
            y = jnp.dot(comb.astype(jnp.bfloat16), w2,
                        preferred_element_type=jnp.float32) + b2
            # torch.relu after every layer in KStepHGCN.
            out_ref[pl.ds(r0, tile_n), :] = jnp.maximum(y, 0.0)
            return carry

        jax.lax.fori_loop(0, num_t, chunk_body, 0, unroll=(num_t <= 4))

        # Lane-dense scores row (K on lanes), built with iota+select.
        lane = jax.lax.broadcasted_iota(jnp.int32, (1, num_k), 1)
        srow = jnp.zeros((1, num_k), jnp.float32)
        for kk in range(num_k):
            srow = jnp.where(lane == kk, score_list[kk], srow)
        scores_ref[0] = srow


def kstep_hgcn(x, G, layer_params):
    """Fused KStepHGCN.forward: both DHGLayers in a single pallas_call."""
    n, c_in = x.shape
    num_k = G.shape[0]
    num_layers = len(layer_params)
    hidden = layer_params[0][0].shape[1]
    c_out = layer_params[-1][3].shape[1]

    # Common lane-dense channel width and (bf16-friendly) 16-aligned node count.
    p = max(_round_up(c_in, 128), _round_up(hidden, 128), _round_up(c_out, 128))
    n_pad = _round_up(n, 16)
    vmem_cap = _vmem_capacity_bytes()
    tile_n = _pick_row_tile(n_pad, num_k, vmem_cap)
    num_t = n_pad // tile_n

    def pad2(mat, rows, cols):
        mat = jnp.asarray(mat, jnp.float32)
        return jnp.zeros((rows, cols), jnp.float32).at[
            :mat.shape[0], :mat.shape[1]].set(mat)

    x_p = pad2(x, n_pad, p).astype(jnp.bfloat16)
    # Zero-pad G rows/cols (keeps the mean/softmax exact) and stream it as bf16.
    g_p = jnp.zeros((num_k, n_pad, n_pad), jnp.float32).at[:, :n, :n].set(
        jnp.asarray(G, jnp.float32)).astype(jnp.bfloat16)

    w1s = jnp.stack([pad2(prm[0], p, p) for prm in layer_params]).astype(jnp.bfloat16)
    b1s = jnp.stack([pad2(prm[1], 1, p) for prm in layer_params])
    a_s = jnp.stack([pad2(prm[2], 1, p) for prm in layer_params])
    w2s = jnp.stack([pad2(prm[3], p, p) for prm in layer_params]).astype(jnp.bfloat16)
    b2s = jnp.stack([pad2(prm[4], 1, p) for prm in layer_params])

    kernel = functools.partial(_kstep_hgcn_kernel, num_k=num_k, n_pad=n_pad,
                               tile_n=tile_n, num_t=num_t, inv_n=1.0 / n)

    # ---- VMEM budget (scratch + double-buffered blocks + headroom). ----
    bytes_scr = (n_pad * p * 2                 # h_scr (bf16)
                 + num_k * n_pad * p * 2       # z_scr (bf16)
                 + 8 * p * 4)                  # zsum (sublane-padded f32)
    bytes_blk = (n_pad * p * 2                 # x (bf16)
                 + num_k * tile_n * n_pad * 2  # G tile (bf16)
                 + 2 * p * p * 2               # W1 + W2 (bf16)
                 + 3 * 8 * p * 4               # b1 / a / b2 (sublane-padded f32)
                 + n_pad * p * 4               # out (f32)
                 + 8 * 128 * 4)                # scores
    vmem_need = bytes_scr + 2 * bytes_blk
    vmem_limit = int(min(max(int(vmem_need * 1.25) + (4 << 20), 32 << 20),
                         vmem_cap - (4 << 20)))

    g_fetches = 1 if num_t == 1 else num_layers
    flops = num_layers * (2 * num_k * n_pad * n_pad * p      # propagation
                          + 4 * n_pad * p * p                # W1 + W2 projections
                          + 4 * num_k * n_pad * p)           # logits + combine
    bytes_accessed = (g_fetches * num_k * n_pad * n_pad * 2  # G streamed (bf16)
                      + n_pad * p * 2 + n_pad * p * 4        # x in (bf16) + out (f32)
                      + num_layers * (2 * p * p * 2 + 3 * p * 4)  # weights
                      + num_layers * num_k * 4)              # scores

    out_p, scores_p = pl.pallas_call(
        kernel,
        out_shape=(jax.ShapeDtypeStruct((n_pad, p), jnp.float32),
                   jax.ShapeDtypeStruct((num_layers, 1, num_k), jnp.float32)),
        grid=(num_layers, num_t),
        in_specs=[
            pl.BlockSpec((n_pad, p), lambda l, t: (0, 0)),                 # x (once)
            pl.BlockSpec((num_k, tile_n, n_pad), lambda l, t: (0, t, 0)),  # G row tiles
            pl.BlockSpec((1, p, p), lambda l, t: (l, 0, 0)),               # W1[l]
            pl.BlockSpec((1, 1, p), lambda l, t: (l, 0, 0)),               # b1[l]
            pl.BlockSpec((1, 1, p), lambda l, t: (l, 0, 0)),               # a[l]
            pl.BlockSpec((1, p, p), lambda l, t: (l, 0, 0)),               # W2[l]
            pl.BlockSpec((1, 1, p), lambda l, t: (l, 0, 0)),               # b2[l]
        ],
        out_specs=(
            pl.BlockSpec((n_pad, p), lambda l, t: (0, 0)),                 # node feats
            pl.BlockSpec((1, 1, num_k), lambda l, t: (l, 0, 0)),           # scores[l]
        ),
        scratch_shapes=[
            pltpu.VMEM((n_pad, p), jnp.bfloat16),           # resident h (MXU operand)
            pltpu.VMEM((num_k * n_pad, p), jnp.bfloat16),   # z = G_k @ h for all k
            pltpu.VMEM((num_k, p), jnp.float32),            # per-k column sums (f32)
        ],
        compiler_params=pltpu.CompilerParams(
            # Both axes have cross-step dependencies (layer is sequential; the
            # softmax over K is a whole-graph reduction), so keep them "arbitrary".
            dimension_semantics=("arbitrary", "arbitrary"),
            vmem_limit_bytes=vmem_limit),
        cost_estimate=pl.CostEstimate(flops=flops,
                                      transcendentals=num_layers * num_k,
                                      bytes_accessed=bytes_accessed),
    )(x_p, g_p, w1s, b1s, a_s, w2s, b2s)

    out = out_p[:n, :c_out]
    score_list = [scores_p[i, 0, :] for i in range(num_layers)]
    return out, score_list


def init_dhg_layer_params(key, c_in, hidden, c_out):
    # has_bias=True; dropout is a no-op in eval mode.
    k1, k2, k3 = jax.random.split(key, 3)
    w1 = jax.random.normal(k1, (c_in, hidden), jnp.float32) * (1.0 / jnp.sqrt(c_in))
    b1 = jnp.zeros((1, hidden), jnp.float32)
    a = jax.random.normal(k2, (1, hidden), jnp.float32) * (1.0 / jnp.sqrt(hidden))
    w2 = jax.random.normal(k3, (hidden, c_out), jnp.float32) * (1.0 / jnp.sqrt(hidden))
    b2 = jnp.zeros((1, c_out), jnp.float32)
    return (w1, b1, a, w2, b2)


# ----------------------------- pure-JAX reference -----------------------------
def _dhg_layer_ref(x, G, w1, b1, a, w2, b2):
    h = x @ w1 + b1
    z = jnp.einsum("knm,mh->knh", G, h)
    e = jnp.mean(jnp.sum(z * a[None, :, :], axis=2), axis=1)
    scores = jax.nn.softmax(e)
    combined = jnp.einsum("k,knh->nh", scores, z)
    return combined @ w2 + b2, scores


def _kstep_hgcn_ref(x, G, layer_params):
    score_list = []
    for prm in layer_params:
        x, s = _dhg_layer_ref(x, G, *prm)
        score_list.append(s)
        x = jnp.maximum(x, 0.0)
    return x, score_list


if __name__ == "__main__":
    # Small deterministic problem: N=16 nodes, K=2 hypergraph operators,
    # in_channels=8, hidden_channels=32, out_channels=16.
    N, K = 16, 2
    in_channels, hidden_channels, out_channels = 8, 32, 16

    root = jax.random.PRNGKey(0)
    kx, kg, kl1, kl2 = jax.random.split(root, 4)

    x = jax.random.normal(kx, (N, in_channels), jnp.float32)

    g_raw = jax.random.uniform(kg, (K, N, N), jnp.float32)
    g_raw = 0.5 * (g_raw + jnp.transpose(g_raw, (0, 2, 1))) + jnp.eye(N)[None]
    G = g_raw / jnp.sum(g_raw, axis=2, keepdims=True)

    layer_params = (
        init_dhg_layer_params(kl1, in_channels, hidden_channels, hidden_channels),
        init_dhg_layer_params(kl2, hidden_channels, hidden_channels, out_channels),
    )

    out, score_list = kstep_hgcn(x, G, layer_params)
    jax.block_until_ready(out)
    for s in score_list:
        jax.block_until_ready(s)

    assert out.shape == (N, out_channels)
    assert len(score_list) == 2 and all(s.shape == (K,) for s in score_list)

    # Loose correctness check vs. pure-JAX reference (x/G/h/z and both projections
    # use bf16 MXU operands inside the kernel, so tolerances are generous).
    ref_out, ref_scores = _kstep_hgcn_ref(x, G, layer_params)
    assert float(jnp.max(jnp.abs(out - ref_out))) < 5e-2
    for s, rs in zip(score_list, ref_scores):
        assert float(jnp.max(jnp.abs(s - rs))) < 1e-2

    print("KERNEL_OK")
</pallas_src>

<mosaic_0001>
module attributes {stable_mosaic.version = 11 : i64} {
  func.func @_kstep_hgcn_kernel(%arg0: i32, %arg1: i32, %arg2: memref<16x128xbf16, #tpu.memory_space<vmem>>, %arg3: memref<2x16x16xbf16, #tpu.memory_space<vmem>>, %arg4: memref<1x128x128xbf16, #tpu.memory_space<vmem>>, %arg5: memref<1x1x128xf32, #tpu.memory_space<vmem>>, %arg6: memref<1x1x128xf32, #tpu.memory_space<vmem>>, %arg7: memref<1x128x128xbf16, #tpu.memory_space<vmem>>, %arg8: memref<1x1x128xf32, #tpu.memory_space<vmem>>, %arg9: memref<16x128xf32, #tpu.memory_space<vmem>>, %arg10: memref<1x1x2xf32, #tpu.memory_space<vmem>>, %arg11: memref<16x128xbf16, #tpu.memory_space<vmem>>, %arg12: memref<32x128xbf16, #tpu.memory_space<vmem>>, %arg13: memref<2x128xf32, #tpu.memory_space<vmem>>) attributes {dimension_semantics = [#tpu.dimension_semantics<arbitrary>, #tpu.dimension_semantics<arbitrary>], iteration_bounds = array<i64: 2, 1>, scalar_prefetch = 0 : i64, scratch_operands = 3 : i64, tpu.core_type = #tpu.core_type<tc>, window_params = [{pipeline_mode = #tpu.pipeline_mode<synchronous>, transform_indices = @transform_0, window_bounds = array<i64: 16, 128>}, {transform_indices = @transform_1, window_bounds = array<i64: 2, 16, 16>}, {transform_indices = @transform_2, window_bounds = array<i64: 1, 128, 128>}, {transform_indices = @transform_3, window_bounds = array<i64: 1, 1, 128>}, {transform_indices = @transform_4, window_bounds = array<i64: 1, 1, 128>}, {transform_indices = @transform_5, window_bounds = array<i64: 1, 128, 128>}, {transform_indices = @transform_6, window_bounds = array<i64: 1, 1, 128>}, {pipeline_mode = #tpu.pipeline_mode<synchronous>, transform_indices = @transform_7, window_bounds = array<i64: 16, 128>}, {transform_indices = @transform_8, window_bounds = array<i64: 1, 1, 2>}]} {
    %c0_i32 = arith.constant 0 : i32
    %0 = arith.cmpi eq, %arg1, %c0_i32 : i32
    %1 = arith.extui %0 : i1 to i32
    %c0_i32_0 = arith.constant 0 : i32
    %2 = arith.cmpi ne, %1, %c0_i32_0 : i32
    scf.if %2 {
      %cst_25 = arith.constant 0.000000e+00 : f32
      %35 = vector.broadcast %cst_25 : f32 to vector<2x128xf32>
      %c0_26 = arith.constant 0 : index
      %c0_27 = arith.constant 0 : index
      %36 = vector.load %arg13[%c0_26, %c0_27] : memref<2x128xf32, #tpu.memory_space<vmem>>, vector<2x128xf32>
      tpu.vector_store %arg13[%c0_26, %c0_27], %35 {strides = array<i32>} : memref<2x128xf32, #tpu.memory_space<vmem>>, vector<2x128xf32>,
      %c0_i32_28 = arith.constant 0 : i32
      %37 = arith.cmpi eq, %arg0, %c0_i32_28 : i32
      %38 = arith.extui %37 : i1 to i32
      %c0_i32_29 = arith.constant 0 : i32
      %39 = arith.cmpi ne, %38, %c0_i32_29 : i32
      scf.if %39 {
        %c0_32 = arith.constant 0 : index
        %c0_33 = arith.constant 0 : index
        %43 = vector.load %arg2[%c0_32, %c0_33] : memref<16x128xbf16, #tpu.memory_space<vmem>>, vector<16x128xbf16>
        %c0_34 = arith.constant 0 : index
        %c0_35 = arith.constant 0 : index
        %c0_36 = arith.constant 0 : index
        %44 = vector.load %arg4[%c0_34, %c0_35, %c0_36] : memref<1x128x128xbf16, #tpu.memory_space<vmem>>, vector<1x128x128xbf16>
        %45 = vector.shape_cast %44 : vector<1x128x128xbf16> to vector<128x128xbf16>
        %cst_37 = arith.constant dense<0.000000e+00> : vector<16x128xf32>
        %46 = tpu.matmul %43, %45, %cst_37 {dimension_numbers = #tpu.dot_dimension_numbers<[1], [0], [0], [1], [0, 0, 1, 1], [], []>} : vector<16x128xbf16>, vector<128x128xbf16>, vector<16x128xf32> -> vector<16x128xf32>
        %c0_38 = arith.constant 0 : index
        %c0_39 = arith.constant 0 : index
        %c0_40 = arith.constant 0 : index
        %47 = vector.load %arg5[%c0_38, %c0_39, %c0_40] : memref<1x1x128xf32, #tpu.memory_space<vmem>>, vector<1x1x128xf32>
        %48 = vector.shape_cast %47 : vector<1x1x128xf32> to vector<1x128xf32>
        %49 = vector.broadcast %48 : vector<1x128xf32> to vector<16x128xf32>
        %50 = arith.addf %46, %49 : vector<16x128xf32>
        %51 = arith.truncf %50 : vector<16x128xf32> to vector<16x128xbf16>
        %c0_41 = arith.constant 0 : index
        %c0_42 = arith.constant 0 : index
        %52 = vector.load %arg11[%c0_41, %c0_42] : memref<16x128xbf16, #tpu.memory_space<vmem>>, vector<16x128xbf16>
        tpu.vector_store %arg11[%c0_41, %c0_42], %51 {strides = array<i32>} : memref<16x128xbf16, #tpu.memory_space<vmem>>, vector<16x128xbf16>,
      } else {
      }
      %c0_i32_30 = arith.constant 0 : i32
      %40 = arith.cmpi ne, %arg0, %c0_i32_30 : i32
      %41 = arith.extui %40 : i1 to i32
      %c0_i32_31 = arith.constant 0 : i32
      %42 = arith.cmpi ne, %41, %c0_i32_31 : i32
      scf.if %42 {
        %c0_32 = arith.constant 0 : index
        %c0_33 = arith.constant 0 : index
        %43 = vector.load %arg9[%c0_32, %c0_33] : memref<16x128xf32, #tpu.memory_space<vmem>>, vector<16x128xf32>
        %44 = arith.truncf %43 : vector<16x128xf32> to vector<16x128xbf16>
        %c0_34 = arith.constant 0 : index
        %c0_35 = arith.constant 0 : index
        %c0_36 = arith.constant 0 : index
        %45 = vector.load %arg4[%c0_34, %c0_35, %c0_36] : memref<1x128x128xbf16, #tpu.memory_space<vmem>>, vector<1x128x128xbf16>
        %46 = vector.shape_cast %45 : vector<1x128x128xbf16> to vector<128x128xbf16>
        %cst_37 = arith.constant dense<0.000000e+00> : vector<16x128xf32>
        %47 = tpu.matmul %44, %46, %cst_37 {dimension_numbers = #tpu.dot_dimension_numbers<[1], [0], [0], [1], [0, 0, 1, 1], [], []>} : vector<16x128xbf16>, vector<128x128xbf16>, vector<16x128xf32> -> vector<16x128xf32>
        %c0_38 = arith.constant 0 : index
        %c0_39 = arith.constant 0 : index
        %c0_40 = arith.constant 0 : index
        %48 = vector.load %arg5[%c0_38, %c0_39, %c0_40] : memref<1x1x128xf32, #tpu.memory_space<vmem>>, vector<1x1x128xf32>
        %49 = vector.shape_cast %48 : vector<1x1x128xf32> to vector<1x128xf32>
        %50 = vector.broadcast %49 : vector<1x128xf32> to vector<16x128xf32>
        %51 = arith.addf %47, %50 : vector<16x128xf32>
        %52 = arith.truncf %51 : vector<16x128xf32> to vector<16x128xbf16>
        %c0_41 = arith.constant 0 : index
        %c0_42 = arith.constant 0 : index
        %53 = vector.load %arg11[%c0_41, %c0_42] : memref<16x128xbf16, #tpu.memory_space<vmem>>, vector<16x128xbf16>
        tpu.vector_store %arg11[%c0_41, %c0_42], %52 {strides = array<i32>} : memref<16x128xbf16, #tpu.memory_space<vmem>>, vector<16x128xbf16>,
      } else {
      }
    } else {
    }
    %c0 = arith.constant 0 : index
    %c0_1 = arith.constant 0 : index
    %3 = vector.load %arg11[%c0, %c0_1] : memref<16x128xbf16, #tpu.memory_space<vmem>>, vector<16x128xbf16>
    %c0_2 = arith.constant 0 : index
    %c0_3 = arith.constant 0 : index
    %c0_4 = arith.constant 0 : index
    %4 = vector.load %arg3[%c0_2, %c0_3, %c0_4] : memref<2x16x16xbf16, #tpu.memory_space<vmem>>, vector<1x16x16xbf16>
    %5 = vector.shape_cast %4 : vector<1x16x16xbf16> to vector<16x16xbf16>
    %cst = arith.constant dense<0.000000e+00> : vector<16x128xf32>
    %6 = tpu.matmul %5, %3, %cst {dimension_numbers = #tpu.dot_dimension_numbers<[1], [0], [0], [1], [0, 0, 1, 1], [], []>} : vector<16x16xbf16>, vector<16x128xbf16>, vector<16x128xf32> -> vector<16x128xf32>
    %c0_5 = arith.constant 0 : index
    %c0_6 = arith.constant 0 : index
    %7 = vector.load %arg13[%c0_5, %c0_6] : memref<2x128xf32, #tpu.memory_space<vmem>>, vector<1x128xf32>
    %cst_7 = arith.constant dense<0.000000e+00> : vector<128xf32>
    %8 = vector.multi_reduction <add>, %6, %cst_7 [0] : vector<16x128xf32> to vector<128xf32>
    %9 = vector.shape_cast %8 : vector<128xf32> to vector<1x128xf32>
    %10 = arith.addf %7, %9 : vector<1x128xf32>
    %c0_8 = arith.constant 0 : index
    %c0_9 = arith.constant 0 : index
    %11 = vector.load %arg13[%c0_8, %c0_9] : memref<2x128xf32, #tpu.memory_space<vmem>>, vector<1x128xf32>
    tpu.vector_store %arg13[%c0_8, %c0_9], %10 {strides = array<i32>} : memref<2x128xf32, #tpu.memory_space<vmem>>, vector<1x128xf32>,
    %c16_i32 = arith.constant 16 : i32
    %12 = arith.muli %arg1, %c16_i32 : i32
    %c0_i32_10 = arith.constant 0 : i32
    %13 = arith.addi %c0_i32_10, %12 : i32
    %14 = tpu.assume_multiple %13, 16 : i32
    %15 = arith.truncf %6 : vector<16x128xf32> to vector<16x128xbf16>
    %16 = arith.index_cast %14 : i32 to index
    %c0_11 = arith.constant 0 : index
    %17 = vector.load %arg12[%16, %c0_11] : memref<32x128xbf16, #tpu.memory_space<vmem>>, vector<16x128xbf16>
    tpu.vector_store %arg12[%16, %c0_11], %15 {strides = array<i32>} : memref<32x128xbf16, #tpu.memory_space<vmem>>, vector<16x128xbf16>,
    %c1 = arith.constant 1 : index
    %c0_12 = arith.constant 0 : index
    %c0_13 = arith.constant 0 : index
    %18 = vector.load %arg3[%c1, %c0_12, %c0_13] : memref<2x16x16xbf16, #tpu.memory_space<vmem>>, vector<1x16x16xbf16>
    %19 = vector.shape_cast %18 : vector<1x16x16xbf16> to vector<16x16xbf16>
    %cst_14 = arith.constant dense<0.000000e+00> : vector<16x128xf32>
    %20 = tpu.matmul %19, %3, %cst_14 {dimension_numbers = #tpu.dot_dimension_numbers<[1], [0], [0], [1], [0, 0, 1, 1], [], []>} : vector<16x16xbf16>, vector<16x128xbf16>, vector<16x128xf32> -> vector<16x128xf32>
    %c1_15 = arith.constant 1 : index
    %c0_16 = arith.constant 0 : index
    %21 = vector.load %arg13[%c1_15, %c0_16] : memref<2x128xf32, #tpu.memory_space<vmem>>, vector<1x128xf32>
    %cst_17 = arith.constant dense<0.000000e+00> : vector<128xf32>
    %22 = vector.multi_reduction <add>, %20, %cst_17 [0] : vector<16x128xf32> to vector<128xf32>
    %23 = vector.shape_cast %22 : vector<128xf32> to vector<1x128xf32>
    %24 = arith.addf %21, %23 : vector<1x128xf32>
    %c1_18 = arith.constant 1 : index
    %c0_19 = arith.constant 0 : index
    %25 = vector.load %arg13[%c1_18, %c0_19] : memref<2x128xf32, #tpu.memory_space<vmem>>, vector<1x128xf32>
    tpu.vector_store %arg13[%c1_18, %c0_19], %24 {strides = array<i32>} : memref<2x128xf32, #tpu.memory_space<vmem>>, vector<1x128xf32>,
    %c16_i32_20 = arith.constant 16 : i32
    %26 = arith.muli %arg1, %c16_i32_20 : i32
    %c16_i32_21 = arith.constant 16 : i32
    %27 = arith.addi %c16_i32_21, %26 : i32
    %28 = tpu.assume_multiple %27, 16 : i32
    %29 = arith.truncf %20 : vector<16x128xf32> to vector<16x128xbf16>
    %30 = arith.index_cast %28 : i32 to index
    %c0_22 = arith.constant 0 : index
    %31 = vector.load %arg12[%30, %c0_22] : memref<32x128xbf16, #tpu.memory_space<vmem>>, vector<16x128xbf16>
    tpu.vector_store %arg12[%30, %c0_22], %29 {strides = array<i32>} : memref<32x128xbf16, #tpu.memory_space<vmem>>, vector<16x128xbf16>,
    %c0_i32_23 = arith.constant 0 : i32
    %32 = arith.cmpi eq, %arg1, %c0_i32_23 : i32
    %33 = arith.extui %32 : i1 to i32
    %c0_i32_24 = arith.constant 0 : i32
    %34 = arith.cmpi ne, %33, %c0_i32_24 : i32
    scf.if %34 {
      %c0_25 = arith.constant 0 : index
      %c0_26 = arith.constant 0 : index
      %c0_27 = arith.constant 0 : index
      %35 = vector.load %arg6[%c0_25, %c0_26, %c0_27] : memref<1x1x128xf32, #tpu.memory_space<vmem>>, vector<1x1x128xf32>
      %36 = vector.shape_cast %35 : vector<1x1x128xf32> to vector<1x128xf32>
      %c0_28 = arith.constant 0 : index
      %c0_29 = arith.constant 0 : index
      %37 = vector.load %arg13[%c0_28, %c0_29] : memref<2x128xf32, #tpu.memory_space<vmem>>, vector<1x128xf32>
      %cst_30 = arith.constant 6.250000e-02 : f32
      %38 = vector.broadcast %cst_30 : f32 to vector<1x128xf32>
      %39 = arith.mulf %37, %38 : vector<1x128xf32>
      %40 = arith.mulf %39, %36 : vector<1x128xf32>
      %cst_31 = arith.constant dense<0.000000e+00> : vector<1xf32>
      %41 = vector.multi_reduction <add>, %40, %cst_31 [1] : vector<1x128xf32> to vector<1xf32>
      %42 = vector.shape_cast %41 : vector<1xf32> to vector<1x1xf32>
      %c1_32 = arith.constant 1 : index
      %c0_33 = arith.constant 0 : index
      %43 = vector.load %arg13[%c1_32, %c0_33] : memref<2x128xf32, #tpu.memory_space<vmem>>, vector<1x128xf32>
      %cst_34 = arith.constant 6.250000e-02 : f32
      %44 = vector.broadcast %cst_34 : f32 to vector<1x128xf32>
      %45 = arith.mulf %43, %44 : vector<1x128xf32>
      %46 = arith.mulf %45, %36 : vector<1x128xf32>
      %cst_35 = arith.constant dense<0.000000e+00> : vector<1xf32>
      %47 = vector.multi_reduction <add>, %46, %cst_35 [1] : vector<1x128xf32> to vector<1xf32>
      %48 = vector.shape_cast %47 : vector<1xf32> to vector<1x1xf32>
      %49 = arith.maximumf %42, %48 : vector<1x1xf32>
      %50 = arith.subf %42, %49 : vector<1x1xf32>
      %51 = math.exp %50 : vector<1x1xf32>
      %52 = arith.subf %48, %49 : vector<1x1xf32>
      %53 = math.exp %52 : vector<1x1xf32>
      %54 = arith.addf %51, %53 : vector<1x1xf32>
      %55 = tpu.reciprocal %54 : vector<1x1xf32> -> vector<1x1xf32>
      %56 = arith.mulf %51, %55 : vector<1x1xf32>
      %57 = arith.mulf %53, %55 : vector<1x1xf32>
      %c0_36 = arith.constant 0 : index
      %c0_37 = arith.constant 0 : index
      %c0_38 = arith.constant 0 : index
      %58 = vector.load %arg7[%c0_36, %c0_37, %c0_38] : memref<1x128x128xbf16, #tpu.memory_space<vmem>>, vector<1x128x128xbf16>
      %59 = vector.shape_cast %58 : vector<1x128x128xbf16> to vector<128x128xbf16>
      %c0_39 = arith.constant 0 : index
      %c0_40 = arith.constant 0 : index
      %c0_41 = arith.constant 0 : index
      %60 = vector.load %arg8[%c0_39, %c0_40, %c0_41] : memref<1x1x128xf32, #tpu.memory_space<vmem>>, vector<1x1x128xf32>
      %61 = vector.shape_cast %60 : vector<1x1x128xf32> to vector<1x128xf32>
      %c0_i32_42 = arith.constant 0 : i32
      %c16_i32_43 = arith.constant 16 : i32
      %62 = arith.muli %c0_i32_42, %c16_i32_43 : i32
      %63 = tpu.assume_multiple %62, 16 : i32
      %64 = arith.index_cast %63 : i32 to index
      %c0_44 = arith.constant 0 : index
      %65 = vector.load %arg12[%64, %c0_44] : memref<32x128xbf16, #tpu.memory_space<vmem>>, vector<16x128xbf16>
      %66 = arith.extf %65 : vector<16x128xbf16> to vector<16x128xf32>
      %67 = vector.broadcast %56 : vector<1x1xf32> to vector<16x128xf32>
      %68 = arith.mulf %67, %66 : vector<16x128xf32>
      %c16_i32_45 = arith.constant 16 : i32
      %69 = arith.muli %c0_i32_42, %c16_i32_45 : i32
      %c16_i32_46 = arith.constant 16 : i32
      %70 = arith.addi %c16_i32_46, %69 : i32
      %71 = tpu.assume_multiple %70, 16 : i32
      %72 = arith.index_cast %71 : i32 to index
      %c0_47 = arith.constant 0 : index
      %73 = vector.load %arg12[%72, %c0_47] : memref<32x128xbf16, #tpu.memory_space<vmem>>, vector<16x128xbf16>
      %74 = arith.extf %73 : vector<16x128xbf16> to vector<16x128xf32>
      %75 = vector.broadcast %57 : vector<1x1xf32> to vector<16x128xf32>
      %76 = arith.mulf %75, %74 : vector<16x128xf32>
      %77 = arith.addf %68, %76 : vector<16x128xf32>
      %78 = arith.truncf %77 : vector<16x128xf32> to vector<16x128xbf16>
      %cst_48 = arith.constant dense<0.000000e+00> : vector<16x128xf32>
      %79 = tpu.matmul %78, %59, %cst_48 {dimension_numbers = #tpu.dot_dimension_numbers<[1], [0], [0], [1], [0, 0, 1, 1], [], []>} : vector<16x128xbf16>, vector<128x128xbf16>, vector<16x128xf32> -> vector<16x128xf32>
      %80 = vector.broadcast %61 : vector<1x128xf32> to vector<16x128xf32>
      %81 = arith.addf %79, %80 : vector<16x128xf32>
      %cst_49 = arith.constant 0.000000e+00 : f32
      %82 = vector.broadcast %cst_49 : f32 to vector<16x128xf32>
      %83 = arith.maximumf %81, %82 : vector<16x128xf32>
      %84 = arith.index_cast %63 : i32 to index
      %c0_50 = arith.constant 0 : index
      %85 = vector.load %arg9[%84, %c0_50] : memref<16x128xf32, #tpu.memory_space<vmem>>, vector<16x128xf32>
      tpu.vector_store %arg9[%84, %c0_50], %83 {strides = array<i32>} : memref<16x128xf32, #tpu.memory_space<vmem>>, vector<16x128xf32>,
      %c1_i32 = arith.constant 1 : i32
      %86 = tpu.iota {dimensions = array<i32: 1>} : vector<1x2xi32>
      %cst_51 = arith.constant 0.000000e+00 : f32
      %87 = vector.broadcast %cst_51 : f32 to vector<1x2xf32>
      %c0_i32_52 = arith.constant 0 : i32
      %88 = vector.broadcast %c0_i32_52 : i32 to vector<1x2xi32>
      %89 = arith.cmpi eq, %86, %88 : vector<1x2xi32>
      %90 = vector.shape_cast %56 : vector<1x1xf32> to vector<1x1xf32>
      %91 = vector.broadcast %90 : vector<1x1xf32> to vector<1x2xf32>
      %92 = arith.select %89, %91, %87 : vector<1x2xi1>, vector<1x2xf32>
      %c1_i32_53 = arith.constant 1 : i32
      %93 = vector.broadcast %c1_i32_53 : i32 to vector<1x2xi32>
      %94 = arith.cmpi eq, %86, %93 : vector<1x2xi32>
      %95 = vector.shape_cast %57 : vector<1x1xf32> to vector<1x1xf32>
      %96 = vector.broadcast %95 : vector<1x1xf32> to vector<1x2xf32>
      %97 = arith.select %94, %96, %92 : vector<1x2xi1>, vector<1x2xf32>
      %c0_54 = arith.constant 0 : index
      %c0_55 = arith.constant 0 : index
      %c0_56 = arith.constant 0 : index
      %98 = vector.load %arg10[%c0_54, %c0_55, %c0_56] : memref<1x1x2xf32, #tpu.memory_space<vmem>>, vector<1x1x2xf32>
      %99 = vector.shape_cast %98 : vector<1x1x2xf32> to vector<1x2xf32>
      %100 = vector.shape_cast %97 : vector<1x2xf32> to vector<1x1x2xf32>
      tpu.vector_store %arg10[%c0_54, %c0_55, %c0_56], %100 {strides = array<i32>} : memref<1x1x2xf32, #tpu.memory_space<vmem>>, vector<1x1x2xf32>,
    } else {
    }
    return
  }
  func.func @transform_0(%arg0: i32, %arg1: i32) -> (i32, i32) {
    %c0_i32 = arith.constant 0 : i32
    %c0_i32_0 = arith.constant 0 : i32
    %c0_i32_1 = arith.constant 0 : i32
    return %c0_i32, %c0_i32_0 : i32, i32
  }
  func.func @transform_1(%arg0: i32, %arg1: i32) -> (i32, i32, i32) {
    %c0_i32 = arith.constant 0 : i32
    %c0_i32_0 = arith.constant 0 : i32
    %c0_i32_1 = arith.constant 0 : i32
    return %c0_i32, %arg1, %c0_i32_0 : i32, i32, i32
  }
  func.func @transform_2(%arg0: i32, %arg1: i32) -> (i32, i32, i32) {
    %c0_i32 = arith.constant 0 : i32
    %c0_i32_0 = arith.constant 0 : i32
    %c0_i32_1 = arith.constant 0 : i32
    return %arg0, %c0_i32, %c0_i32_0 : i32, i32, i32
  }
  func.func @transform_3(%arg0: i32, %arg1: i32) -> (i32, i32, i32) {
    %c0_i32 = arith.constant 0 : i32
    %c0_i32_0 = arith.constant 0 : i32
    %c0_i32_1 = arith.constant 0 : i32
    return %arg0, %c0_i32, %c0_i32_0 : i32, i32, i32
  }
  func.func @transform_4(%arg0: i32, %arg1: i32) -> (i32, i32, i32) {
    %c0_i32 = arith.constant 0 : i32
    %c0_i32_0 = arith.constant 0 : i32
    %c0_i32_1 = arith.constant 0 : i32
    return %arg0, %c0_i32, %c0_i32_0 : i32, i32, i32
  }
  func.func @transform_5(%arg0: i32, %arg1: i32) -> (i32, i32, i32) {
    %c0_i32 = arith.constant 0 : i32
    %c0_i32_0 = arith.constant 0 : i32
    %c0_i32_1 = arith.constant 0 : i32
    return %arg0, %c0_i32, %c0_i32_0 : i32, i32, i32
  }
  func.func @transform_6(%arg0: i32, %arg1: i32) -> (i32, i32, i32) {
    %c0_i32 = arith.constant 0 : i32
    %c0_i32_0 = arith.constant 0 : i32
    %c0_i32_1 = arith.constant 0 : i32
    return %arg0, %c0_i32, %c0_i32_0 : i32, i32, i32
  }
  func.func @transform_7(%arg0: i32, %arg1: i32) -> (i32, i32) {
    %c0_i32 = arith.constant 0 : i32
    %c0_i32_0 = arith.constant 0 : i32
    %c0_i32_1 = arith.constant 0 : i32
    return %c0_i32, %c0_i32_0 : i32, i32
  }
  func.func @transform_8(%arg0: i32, %arg1: i32) -> (i32, i32, i32) {
    %c0_i32 = arith.constant 0 : i32
    %c0_i32_0 = arith.constant 0 : i32
    %c0_i32_1 = arith.constant 0 : i32
    return %arg0, %c0_i32, %c0_i32_0 : i32, i32, i32
  }
}

</mosaic_0001>

<bundles_post_ra>
// kernel: tpu_custom_call.1
= control target key start
LH: loop header
LB: loop body
LE: loop exit
PB: predicated region body
PF: predicated region fallthrough
CT: control target
= control target key end

     0   :  { %s2195_s0 = inlined_call_operand.hbm [shape: bf16[16,128], index: 0, kind: input, shape index: {}]   ;;  %s2196_s1 = inlined_call_operand.hbm [shape: bf16[2,16,16], index: 1, kind: input, shape index: {}]   ;;  %s2197_s2 = inlined_call_operand.hbm [shape: bf16[2,128,128], index: 2, kind: input, shape index: {}]   ;;  %s2198_s3 = inlined_call_operand.vmem [shape: f32[2,1,128], index: 3, kind: input, shape index: {}]   ;;  %s2199_s4 = inlined_call_operand.vmem [shape: f32[2,1,128], index: 4, kind: input, shape index: {}]   ;;  %s2200_s5 = inlined_call_operand.hbm [shape: bf16[2,128,128], index: 5, kind: input, shape index: {}]   ;;  %s2201_s6 = inlined_call_operand.vmem [shape: f32[2,1,128], index: 6, kind: input, shape index: {}]   ;;  %s2202_s7 = inlined_call_operand.hbm [shape: f32[16,128], index: 7, kind: output, shape index: {0}]   ;;  %s2203_s8 = inlined_call_operand.hbm [shape: f32[2,1,2], index: 8, kind: output, shape index: {1}]  }
   0x1   :  { %2214 = sst [smem:[#allocation23_spill]] %s2195_s0 }
   0x2   :  { %2215 = sst [smem:[#allocation24_spill]] %s2199_s4 }
   0x3   :  { %2216 = sst [smem:[#allocation25_spill]] %s2201_s6 }
   0x4   :  { %2217 = sst [smem:[#allocation26_spill]] %s2202_s7 }
   0x5   :  { %2218 = sst [smem:[#allocation27_spill]] %s2203_s8 }
   0x6   :  { %14 = vsyncpa [#allocation6], 0 }
   0x7   :  { %15 = vsyncpa [#allocation9], 0 }
   0x8   :  { %16 = vsyncpa [#allocation7], 0 }
   0x9   :  { %17 = vsyncpa [#allocation14], 0 }
   0xa   :  { %19 = vsyncpa [#allocation14 + $0x1], 0  ;;  %s1876_s27 = smov 0   ;;  %s1878_s28 = smov 0  }
   0xb   :  { %s1880_s29 = smov 0   ;;  %s1882_s30 = smov 0  }
   0xc   :  { %s1884_s9 = smov 0   ;;  %s1886_s10 = smov 0  }
   0xd LB: > { %2219 = sst [smem:[#allocation20_spill]] %s1793_s27  ;;  %s1907_s11 = sadd.s32 4294967295, %s1813_s10   ;;  %s1813_s10 = sphi %s1886_s10, %s25_s10   ;;  %s1809_s9 = sphi %s1884_s9, %s2257_s9   ;;  %s1805_s30 = sphi %s1882_s30, %s2256_s30   ;;  %s1801_s29 = sphi %s1880_s29, %s2255_s29   ;;  %s1797_s28 = sphi %s1878_s28, %s2254_s28   ;;  %s1793_s27 = sphi %s1876_s27, %s2253_s27  }
   0xe   : > { %s1242_s12 = sadd.s32 4294967294, %s1813_s10   ;;  %p98_p0 = scmp.ne.s32.totalorder %s1801_s29, %s1797_s28 }
   0xf   : > { %p99_p1 = scmp.eq.s32.totalorder %s1813_s10, 0  ;;  %p104_p2 = scmp.ne.s32.totalorder %s1797_s28, %s1793_s27 }
  0x10   : > { %p2205_p3 = scmp.eq.s32.totalorder %s1907_s11, 0  ;;  %p2204_p4 = scmp.eq.s32.totalorder %s1907_s11, 1 }
  0x11   : > { %p1918_p5 = por %p99_p1, %p98_p0  ;;  %p259_p6 = scmp.eq.s32.totalorder %s1242_s12, 1 }
  0x12   : > { %p1924_p7 = por %p2205_p3, %p104_p2  ;;  %p1930_p8 = por %p2204_p4, %p98_p0 }
  0x13   : > { %p1934_p9 = por %p259_p6, %p104_p2  ;;  %p1243_p10 = scmp.ge.s32.totalorder %s1813_s10, 1 }
  0x14   : > { %s2222_s16 = scalar_select %p1930_p8, 1, 0 }
  0x15   : > { %s2224_s17 = scalar_select %p1934_p9, 1, 0 }
  0x16   : > { %2223 = sst [smem:[#allocation21_spill]] %s2222_s16  ;;  %p266_p11 = scmp.lt.s32.totalorder %s1813_s10, 3 }
  0x17   : > { %2225 = sst [smem:[#allocation22_spill]] %s2224_s17  ;;  %s1815_s19 = smov [#allocation5]  }
  0x18   : > { %p1940_p12 = pnand %p1243_p10, %p266_p11  ;;  %s278_s20 = sshll.u32 %s1815_s19, 4  ;;  %s279_s20 = int_to_ptr.vmem [resolvable:$true] %s278_s20 }
  0x19   : > { %p1488_p1 = scmp.lt.s32.totalorder %s1813_s10, 2  ;;  %s37_s23 = sadd.s32 1, %s1809_s9 }
  0x1a   : > { %p1468_p13 = pneg %p1940_p12  ;;  %p1961_p6 = scmp.ge.s32.totalorder %s37_s23, 2 }
  0x1b   : > { %p1956_p2 = pnand %p1488_p1, %p1918_p5  ;;  %s1600_s25 = scalar_lea.vmem %s279_s20, 128 }
  0x1c   : > { %p1950_p4 = pnand %p1468_p13, %p2205_p3  ;;  %p1601_p11 = scmp.ne.s32.totalorder %s279_s20, %s1600_s25 }
  0x1d   : > { %p1608_p3 = scmp.lt.s32.totalorder %s279_s20, %s279_s20  ;;  %p1609_p9 = scmp.lt.s32.totalorder %s1600_s25, %s1600_s25 }
  0x1e   : > { %p1591_p10 = pneg %p1950_p4 }
  0x1f   : > { %p1610_p8 = por %p1609_p9, %p1608_p3 }
  0x20   : > { %p1603_p13 = pnand %p1601_p11, %p1591_p10 }
  0x22   : > { %p1604_p0 = pneg %p1603_p13 }
  0x24   : > { %p1611_p5 = pnand %p1610_p8, %p1604_p0 }
  0x26   : > { %1614 = shalt.err (!%p1611_p5)
}
  0x27   : > { %s2212_s26 = smov 64   ;;  %s1817_s12 = smov 4  }
  0x28   : > { %s2230_s0 = sld [smem:[#allocation23_spill]]  ;;  %s308_s25 = sand.u32 1, %s1813_s10  }
  0x29   : > { %s2259_s23 = smov (%p1961_p6, %s37_s23), 0  ;;  %s310_s13 = sand.u32 1, %s1801_s29  }
  0x2a   : > { %s88_s17 = ssub.s32 %s1809_s9, %s2259_s23  ;;  %s1986_s27 = sshll.u32 %s310_s13, 6 }
  0x2b   : > { %p89_p3 = scmp.eq.s32.totalorder %s88_s17, 0  ;;  %s1308_s7 = sshll.u32 %s1809_s9, 10 }
  0x2c   : > { %s312_s8 = scalar_lea.vmem [#allocation10], %s1986_s27  ;;  %s2231_s6 = sadd.s32 1, %s1801_s29 }
  0x2d   : > { %s319_s16 = sshll.u32 %s312_s8, 4  ;;  %s318_s24 = scalar_lea.hbm %s2197_s2, %s1308_s7  ;;  %s320_s16 = int_to_ptr.vmem [resolvable:$true] %s319_s16 }
  0x2e   : > { %1471 = dma.hbm_to_vmem [thread:$0]  (!%p1950_p4), %s2230_s0, 128, %s279_s20, [#allocation6], %s2212_s26, %s2212_s26, %s1817_s12  }
  0x2f   : > { %s1993_s4 = scalar_select %p89_p3, %s1801_s29, %s2231_s6  }
  0x30   : > { %s1998_s19 = scalar_lea.sflag [#allocation6], %s308_s25  ;;  %p1617_p8 = pneg %p1956_p2 }
  0x31   : > { %s1628_s26 = scalar_lea.vmem %s320_s16, 1024  ;;  %s1818_s13 = smov [#allocation10]  }
  0x32   : > { %p1629_p9 = scmp.ne.s32.totalorder %s320_s16, %s1628_s26  ;;  %s1633_s8 = sshll.u32 %s1818_s13, 4  ;;  %s1634_s8 = int_to_ptr.vmem [resolvable:$false] %s1633_s8 }
  0x33   : > { %s1635_s6 = scalar_lea.vmem %s1634_s8, 2048  ;;  %p1636_p6 = scmp.lt.s32.totalorder %s320_s16, %s1634_s8 }
  0x34   : > { %p1631_p0 = pnand %p1629_p9, %p1617_p8  ;;  %p1637_p11 = scmp.lt.s32.totalorder %s1635_s6, %s1628_s26 }
  0x36   : > { %p1632_p1 = pneg %p1631_p0  ;;  %p1638_p13 = por %p1637_p11, %p1636_p6 }
  0x38   : > { %p1639_p5 = pnand %p1638_p13, %p1632_p1 }
  0x3a   : > { %1642 = shalt.err (!%p1639_p5)
}
  0x3b   : > { %s2232_s17 = smov 64   ;;  %s1819_s25 = smov [#allocation8]  }
  0x3c   : > { %1478 = dma.hbm_to_vmem [thread:$0]  (!%p1956_p2), %s318_s24, 1024, %s320_s16, %s1998_s19, %s2232_s17, %s2232_s17, %s1817_s12  }
  0x3d   : > { %s294_s14 = sshll.u32 %s1819_s25, 4  ;;  %s2014_s0 = scalar_lea.hbm %s2200_s5, %s1308_s7  ;;  %s295_s14 = int_to_ptr.vmem [resolvable:$true] %s294_s14 }
  0x3e   : > { %s345_s26 = scalar_lea.vmem [#allocation11], %s1986_s27  ;;  %s1654_s6 = scalar_lea.vmem %s295_s14, 256 }
  0x3f   : > { %s352_s8 = sshll.u32 %s345_s26, 4  ;;  %p1655_p3 = scmp.ne.s32.totalorder %s295_s14, %s1654_s6  ;;  %s353_s8 = int_to_ptr.vmem [resolvable:$true] %s352_s8 }
  0x40   : > { %p1662_p1 = scmp.lt.s32.totalorder %s295_s14, %s295_s14  ;;  %p1663_p6 = scmp.lt.s32.totalorder %s1654_s6, %s1654_s6 }
  0x41   : > { %p1657_p9 = pnand %p1655_p3, %p1591_p10 }
  0x42   : > { %p1664_p11 = por %p1663_p6, %p1662_p1 }
  0x43   : > { %p1658_p0 = pneg %p1657_p9 }
  0x45   : > { %p1665_p13 = pnand %p1664_p11, %p1658_p0 }
  0x47   : > { %1668 = shalt.err (!%p1665_p13)
}
  0x48   : > { %1474 = dma.hbm_to_vmem [thread:$0]  (!%p1950_p4), %s2196_s1, 256, %s295_s14, [#allocation9], %s2232_s17, %s2232_s17, %s1817_s12  }
  0x49   : > { %s1682_s27 = scalar_lea.vmem %s353_s8, 1024  ;;  %s1820_s24 = smov [#allocation11]  }
  0x4a   : > { %p1683_p5 = scmp.ne.s32.totalorder %s353_s8, %s1682_s27  ;;  %s1687_s25 = sshll.u32 %s1820_s24, 4  ;;  %s1688_s25 = int_to_ptr.vmem [resolvable:$false] %s1687_s25 }
  0x4b   : > { %s1689_s20 = scalar_lea.vmem %s1688_s25, 2048  ;;  %p1690_p9 = scmp.lt.s32.totalorder %s353_s8, %s1688_s25 }
  0x4c   : > { %p1685_p10 = pnand %p1683_p5, %p1617_p8  ;;  %p1691_p0 = scmp.lt.s32.totalorder %s1689_s20, %s1682_s27 }
  0x4e   : > { %p1686_p3 = pneg %p1685_p10  ;;  %p1692_p1 = por %p1691_p0, %p1690_p9 }
  0x50   : > { %p1693_p6 = pnand %p1692_p1, %p1686_p3 }
  0x52   : > { %1696 = shalt.err (!%p1693_p6)
}
  0x53   : > { %1481 = dma.hbm_to_vmem [thread:$0]  (!%p1956_p2), %s2014_s0, 1024, %s353_s8, %s1998_s19, %s2232_s17, %s2232_s17, %s1817_s12  }
  0x54   : > { %370 = sbr.rel (%p1940_p12) target bundleno = 1227 (0x4cb), region = 48  ;;  %p2233_p4 = scmp.eq.s32.totalorder (!%p1940_p12), %s1907_s11, 0 }
  0x59   : > { %1772 = dma.done.wait (%p2233_p4), [#allocation6], 128   ;;  %p2234_p8 = pmov %p2233_p4 }
  0x5a   : > { %p2235_p11 = pmov %p2233_p4 }
  0x5b   : > { %1774 = vsyncadd (%p2234_p8), [#allocation6], 4294967168 }
  0x5c   : > { %1776 = dma.done.wait (%p2235_p11), [#allocation9], 256   ;;  %p2236_p13 = pmov %p2233_p4 }
  0x5d   : > { %s380_s21 = sand.u32 1, %s1907_s11   ;;  %s2050_s0 = sand.u32 1, %s1797_s28  }
  0x5e   : > { %1778 = vsyncadd (%p2236_p13), [#allocation9], 4294967040  ;;  %s1256_s18 = sshll.u32 %s2050_s0, 6  ;;  %s381_s22 = scalar_lea.sflag [#allocation6], %s380_s21 }
  0x5f   : > { %s2053_s12 = scalar_lea.vmem [#allocation10], %s1256_s18 }
  0x60   : > { %1780 = dma.done.wait (%p1924_p7), %s381_s22, 2048  }
  0x61   : > { %1782 = vsyncadd (%p1924_p7), %s381_s22, 4294965248  ;;  %p440_p12 = scmp.lt.s32.totalorder %s1805_s30, 1  ;;  %v1821_v0 = vmov 0.0   ;;  %s2237_s8 = sld [smem:[#allocation24_spill]] }
  0x62   : > { %454 = vst [vmem:[#allocation4] sm:$0x3] %v1821_v0  ;;  %s2238_s27 = sld [smem:[#allocation25_spill]]  ;;  %s2078_s25 = scalar_lea.vmem [#allocation11], %s1256_s18 }
  0x63   : > { %s2062_s19 = scalar_select %p440_p12, %s1805_s30, 1 }
  0x64   : > { %s438_s20 = scalar_lea.vmem [#allocation13], %s2050_s0  ;;  %p1258_p7 = scmp.ne.s32.totalorder %s1805_s30, 0 }
  0x65   : > { %s2068_s13 = scalar_lea.vmem %s2198_s3, %s2062_s19 }
  0x66   : > { %458 = sbr.rel (%p1258_p7) target bundleno = 342 (0x156), region = 72 }
  0x67   : > { %s445_s6 = scalar_lea.vmem %s2237_s8, %s2062_s19 }
  0x68   : > { %s448_s24 = scalar_lea.vmem %s2238_s27, %s2062_s19 }
  0x6b   : > { %v1555_v1 = vld [vmem:[%s2053_s12 + $0x38] sm:$0xff]   ;;  %v1822_v2 = vmov 0.0   ;;  %v1556_v3 = vld [vmem:[%s2053_s12 + $0x30] sm:$0xff]   ;;  %vm1823_vm0 = vmmov 0   ;;  %v1557_v4 = vld [vmem:[%s2053_s12 + $0x28] sm:$0xff]  }
  0x6c   : > { %1378 = vmatprep.subr.bf16.mxu0 %v1822_v2  ;;  %1394 = vmatprep.mubr.msk.bf16.mxu0 %vm1823_vm0, %v1822_v2  ;;  %v1558_v5 = vld [vmem:[%s2053_s12 + $0x20] sm:$0xff]   ;;  %v1559_v6 = vld [vmem:[%s2053_s12 + $0x18] sm:$0xff]   ;;  %v1560_v7 = vld [vmem:[%s2053_s12 + $0x10] sm:$0xff]  }
  0x6d   : > { %1379 = vmatpush3.bf16.msra.mxu0 %v1555_v1  ;;  %v1561_v8 = vld [vmem:[%s2053_s12 + $0x8] sm:$0xff]   ;;  %v1562_v9 = vld [vmem:[%s2053_s12] sm:$0xff]   ;;  %v1259_v12 = vld [vmem:[%s2068_s13] ss:$0 sm:$0xff] }
  0x6e   : > { %1380 = vmatprep.subr.bf16.mxu0 %v1822_v2  ;;  %v1563_v10 = vld [vmem:[#allocation5] sm:$0xff]  }
  0x71   : > { %1381 = vmatpush3.bf16.msra.mxu0 %v1556_v3 }
  0x72   : > { %1382 = vmatprep.subr.bf16.mxu0 %v1822_v2 }
  0x75   : > { %1383 = vmatpush3.bf16.msra.mxu0 %v1557_v4 }
  0x76   : > { %1384 = vmatprep.subr.bf16.mxu0 %v1822_v2 }
  0x79   : > { %1385 = vmatpush3.bf16.msra.mxu0 %v1558_v5 }
  0x7a   : > { %1386 = vmatprep.subr.bf16.mxu0 %v1822_v2 }
  0x7d   : > { %1387 = vmatpush3.bf16.msra.mxu0 %v1559_v6 }
  0x7e   : > { %1388 = vmatprep.subr.bf16.mxu0 %v1822_v2 }
  0x81   : > { %1389 = vmatpush3.bf16.msra.mxu0 %v1560_v7 }
  0x82   : > { %1390 = vmatprep.subr.bf16.mxu0 %v1822_v2 }
  0x85   : > { %1391 = vmatpush3.bf16.msra.mxu0 %v1561_v8 }
  0x86   : > { %1392 = vmatprep.subr.bf16.mxu0 %v1822_v2 }
  0x89   : > { %1393 = vmatpush3.bf16.msra.mxu0 %v1562_v9 }
  0x8c   : > { %1395 = vmatmul.mubr.bf16.vlgmr.msra.gmra.mxu0 %v1563_v10 }
 0x14c   : > { %v572_v11 = vpop.f32.mrf.mxu0 }
 0x14d   : > { %v573_v15 = vadd.f32 %v1259_v12, %v572_v11 }
 0x14e   : > { %v1396_v13 = vpop.f32.mrf.mxu0 }
 0x150   : > { %v575_v14 = vpop.f32.mrf.mxu0 }
 0x151   : > { %v576_v16 = vadd.f32 %v1259_v12, %v575_v14 }
 0x152   : > { %v1397_v17 = vpop.f32.mrf.mxu0 }
 0x153   : > { %v1321_v18 = vpack.c.bf16 %v576_v16, %v573_v15 }
 0x155   : > { %1322 = vst [vmem:[#allocation2] sm:$0xff] %v1321_v18  }
 0x156 PF: > { %p1271_p2 = scmp.eq.s32.totalorder %s1805_s30, 0 }
 0x158   : > { %592 = sbr.rel (%p1271_p2) target bundleno = 584 (0x248), region = 76 }
 0x15d   : > { %v1564_v19 = vld [vmem:[%s2053_s12 + $0x38] sm:$0xff]   ;;  %v1824_v20 = vmov 0.0   ;;  %v1565_v21 = vld [vmem:[%s2053_s12 + $0x30] sm:$0xff]   ;;  %vm1825_vm1 = vmmov 0   ;;  %v1566_v22 = vld [vmem:[%s2053_s12 + $0x28] sm:$0xff]  }
 0x15e   : > { %1398 = vmatprep.subr.bf16.mxu0 %v1824_v20  ;;  %1414 = vmatprep.mubr.msk.bf16.mxu0 %vm1825_vm1, %v1824_v20  ;;  %v1567_v23 = vld [vmem:[%s2053_s12 + $0x20] sm:$0xff]   ;;  %v1568_v24 = vld [vmem:[%s2053_s12 + $0x18] sm:$0xff]   ;;  %v1569_v25 = vld [vmem:[%s2053_s12 + $0x10] sm:$0xff]  }
 0x15f   : > { %1399 = vmatpush3.bf16.msra.mxu0 %v1564_v19  ;;  %v1570_v26 = vld [vmem:[%s2053_s12 + $0x8] sm:$0xff]   ;;  %v1571_v27 = vld [vmem:[%s2053_s12] sm:$0xff]   ;;  %v1272_v32 = vld [vmem:[%s2068_s13] ss:$0 sm:$0xff] }
 0x160   : > { %1400 = vmatprep.subr.bf16.mxu0 %v1824_v20  ;;  %v593_v28 = vld [vmem:[#allocation12] sm:$0xff]  ;;  %v594_v29 = vld [vmem:[#allocation12 + $0x8] sm:$0xff] }
 0x161   : > { %v595_v30 = vpack.c.bf16 %v594_v29, %v593_v28 }
 0x163   : > { %1401 = vmatpush3.bf16.msra.mxu0 %v1565_v21 }
 0x164   : > { %1402 = vmatprep.subr.bf16.mxu0 %v1824_v20 }
 0x167   : > { %1403 = vmatpush3.bf16.msra.mxu0 %v1566_v22 }
 0x168   : > { %1404 = vmatprep.subr.bf16.mxu0 %v1824_v20 }
 0x16b   : > { %1405 = vmatpush3.bf16.msra.mxu0 %v1567_v23 }
 0x16c   : > { %1406 = vmatprep.subr.bf16.mxu0 %v1824_v20 }
 0x16f   : > { %1407 = vmatpush3.bf16.msra.mxu0 %v1568_v24 }
 0x170   : > { %1408 = vmatprep.subr.bf16.mxu0 %v1824_v20 }
 0x173   : > { %1409 = vmatpush3.bf16.msra.mxu0 %v1569_v25 }
 0x174   : > { %1410 = vmatprep.subr.bf16.mxu0 %v1824_v20 }
 0x177   : > { %1411 = vmatpush3.bf16.msra.mxu0 %v1570_v26 }
 0x178   : > { %1412 = vmatprep.subr.bf16.mxu0 %v1824_v20 }
 0x17b   : > { %1413 = vmatpush3.bf16.msra.mxu0 %v1571_v27 }
 0x17e   : > { %1415 = vmatmul.mubr.bf16.vlgmr.msra.gmra.mxu0 %v595_v30 }
 0x23e   : > { %v701_v31 = vpop.f32.mrf.mxu0 }
 0x23f   : > { %v702_v35 = vadd.f32 %v1272_v32, %v701_v31 }
 0x240   : > { %v1416_v33 = vpop.f32.mrf.mxu0 }
 0x242   : > { %v704_v34 = vpop.f32.mrf.mxu0 }
 0x243   : > { %v705_v36 = vadd.f32 %v1272_v32, %v704_v34 }
 0x244   : > { %v1417_v37 = vpop.f32.mrf.mxu0 }
 0x245   : > { %v1326_v38 = vpack.c.bf16 %v705_v36, %v702_v35 }
 0x247   : > { %1327 = vst [vmem:[#allocation2] sm:$0xff] %v1326_v38  }
 0x248 PF: > { %1418 = vmatprep.subr.bf16.mxu1 %v1821_v0  ;;  %1430 = vmatprep.subr.bf16.mxu0 %v1821_v0  ;;  %vm1826_vm2 = vmmov 0   ;;  %v1573_v40 = vld [vmem:[#allocation8] sm:$0xff]   ;;  %vm733_vm3 = vcmask 130048   ;;  %v1574_v41 = vld [vmem:[#allocation8 + $0x8] sm:$0xff]   ;;  %v778_v60 = vld [vmem:[#allocation4] sm:$0x1]  ;;  %v929_v34 = vlaneseq }
 0x249   : > { %1420 = vmatprep.mubr.msk.bf16.mxu1 %vm1826_vm2, %v1821_v0  ;;  %1446 = vmatprep.mubr.msk.bf16.mxu0 %vm1826_vm2, %v1821_v0  ;;  %v855_v4 = vld [vmem:[#allocation4 + $0x1] sm:$0x1]  ;;  %v883_v7 = vld [vmem:[%s445_s6] sm:$0x1]  ;;  %vm887_vm4 = vcmask 1040384   ;;  %v1576_v17 = vld [vmem:[%s2078_s25 + $0x30] sm:$0xff]  }
 0x24a   : > { %v1575_v16 = vld [vmem:[%s2078_s25 + $0x38] sm:$0xff]   ;;  %v1577_v18 = vld [vmem:[%s2078_s25 + $0x28] sm:$0xff]   ;;  %v1578_v19 = vld [vmem:[%s2078_s25 + $0x20] sm:$0xff]   ;;  %v930_v35 = vshrl.u32 %v929_v34, 7  ;;  %v1049_v36 = vand.u32 127, %v929_v34  ;;  %vm1054_vm7 = vcmask 8192  }
 0x24b   : > { %1431 = vmatpush3.bf16.msra.mxu0 %v1575_v16  ;;  %v1579_v20 = vld [vmem:[%s2078_s25 + $0x18] sm:$0xff]   ;;  %v1580_v21 = vld [vmem:[%s2078_s25 + $0x10] sm:$0xff]   ;;  %v1581_v22 = vld [vmem:[%s2078_s25 + $0x8] sm:$0xff]   ;;  %s2240_s12 = sld [smem:[#allocation21_spill]]  ;;  %s1304_s17 = sshll.u32 %s1805_s30, 4 }
 0x24c   : > { %1432 = vmatprep.subr.bf16.mxu0 %v1821_v0  ;;  %v1582_v23 = vld [vmem:[%s2078_s25] sm:$0xff]   ;;  %v931_v37 = vsub.s32 0, %v930_v35  ;;  %vm1050_vm5 = vcmp.eq.s32.totalorder %v1049_v36, 0  ;;  %vm1052_vm6 = vcmp.eq.s32.totalorder %v1049_v36, 1  ;;  %s2241_s26 = sld [smem:[#allocation27_spill]]  ;;  %s1082_s8 = sshll.u32 %s438_s20, 4  ;;  %s1083_s8 = int_to_ptr.vmem [resolvable:$true] %s1082_s8 }
 0x24d   : > { %s1057_s6 = scalar_lea.sflag [#allocation14], %s2050_s0  ;;  %s1697_s7 = scalar_lea.vmem %s1083_s8, 16 }
 0x24e   : > { %v1572_v39 = vld [vmem:[#allocation2] sm:$0xff]   ;;  %p1698_p5 = scmp.ne.s32.totalorder %s1083_s8, %s1697_s7  ;;  %s1827_s16 = smov [#allocation13]  }
 0x24f   : > { %1419 = vmatpush3.bf16.msra.mxu1 %v1572_v39  ;;  %1433 = vmatpush3.bf16.msra.mxu0 %v1576_v17  ;;  %s1701_s27 = sshll.u32 %s1827_s16, 4  ;;  %s1702_s27 = int_to_ptr.vmem [resolvable:$false] %s1701_s27 }
 0x250   : > { %1424 = vmatprep.subr.bf16.mxu1 %v1821_v0  ;;  %1434 = vmatprep.subr.bf16.mxu0 %v1821_v0  ;;  %s1703_s25 = scalar_lea.vmem %s1702_s27, 32  ;;  %p1704_p0 = scmp.lt.s32.totalorder %s1083_s8, %s1702_s27 }
 0x251   : > { %p2242_p10 = scmp.ne.s32.totalorder %s2240_s12, 0  ;;  %p1705_p1 = scmp.lt.s32.totalorder %s1703_s25, %s1697_s7 }
 0x252   : > { %1421 = vmatmul.mubr.msk.bf16.vlgmr.msra.gmra.mxu1 %vm733_vm3, %v1573_v40  ;;  %s1080_s15 = scalar_lea.hbm %s2241_s26, %s1304_s17 }
 0x253   : > { %1425 = vmatpush3.bf16.msra.mxu1 %v1572_v39  ;;  %1426 = vmatprep.mubr.msk.bf16.mxu1 %vm1826_vm2, %v1821_v0  ;;  %p1699_p3 = pnand %p1698_p5, %p2242_p10  ;;  %p1706_p6 = por %p1705_p1, %p1704_p0 }
 0x254   : > { %1435 = vmatpush3.bf16.msra.mxu0 %v1577_v18 }
 0x255   : > { %1436 = vmatprep.subr.bf16.mxu0 %v1821_v0  ;;  %p1700_p9 = pneg %p1699_p3 }
 0x257   : > { %p1707_p4 = pnand %p1706_p6, %p1700_p9 }
 0x258   : > { %1437 = vmatpush3.bf16.msra.mxu0 %v1578_v19 }
 0x259   : > { %1438 = vmatprep.subr.bf16.mxu0 %v1821_v0 }
 0x25a   : > { %1427 = vmatmul.mubr.msk.bf16.vlgmr.msra.gmra.mxu1 %vm733_vm3, %v1574_v41 }
 0x25c   : > { %1439 = vmatpush3.bf16.msra.mxu0 %v1579_v20 }
 0x25d   : > { %1440 = vmatprep.subr.bf16.mxu0 %v1821_v0 }
 0x260   : > { %1441 = vmatpush3.bf16.msra.mxu0 %v1580_v21 }
 0x261   : > { %1442 = vmatprep.subr.bf16.mxu0 %v1821_v0 }
 0x264   : > { %1443 = vmatpush3.bf16.msra.mxu0 %v1581_v22 }
 0x265   : > { %1444 = vmatprep.subr.bf16.mxu0 %v1821_v0 }
 0x268   : > { %1445 = vmatpush3.bf16.msra.mxu0 %v1582_v23 }
 0x312   : > { %v771_v42 = vpop.f32.mrf.mxu1 }
 0x314   : > { %v1422_v43 = vpop.f32.mrf.mxu1 }
 0x316   : > { %v774_v44 = vpop.f32.mrf.mxu1 }
 0x317   : > { %v779_v45 = vadd.f32 %v774_v44, %v771_v42  ;;  %v2107_v46 = vpack.c.bf16 %v774_v44, %v771_v42 }
 0x318   : > { %v1423_v47 = vpop.f32.mrf.mxu1 }
 0x319   : > { %v780_v48 = vrot.slane %v779_v45, 4  ;;  %v1340_v40 = vunpack.c.l.bf16 %v2107_v46  ;;  %v1341_v41 = vunpack.c.h.bf16 %v2107_v46 }
 0x31a   : > { %v848_v49 = vpop.f32.mrf.mxu1 }
 0x31b   : > { %v781_v50 = vadd.f32 %v780_v48, %v779_v45 }
 0x31c   : > { %v1428_v51 = vpop.f32.mrf.mxu1 }
 0x31d   : > { %v782_v52 = vrot.slane %v781_v50, 2 }
 0x31e   : > { %v851_v53 = vpop.f32.mrf.mxu1 }
 0x31f   : > { %v783_v54 = vadd.f32 %v782_v52, %v781_v50  ;;  %v856_v55 = vadd.f32 %v851_v53, %v848_v49  ;;  %v2109_v56 = vpack.c.bf16 %v851_v53, %v848_v49 }
 0x320   : > { %v1429_v57 = vpop.f32.mrf.mxu1 }
 0x321   : > { %v784_v58 = vrot.slane %v783_v54, 1  ;;  %v857_v59 = vrot.slane %v856_v55, 4  ;;  %v1344_v42 = vunpack.c.l.bf16 %v2109_v56  ;;  %v1345_v43 = vunpack.c.h.bf16 %v2109_v56 }
 0x323   : > { %v785_v61 = vadd.f32 %v784_v58, %v783_v54  ;;  %v858_v62 = vadd.f32 %v857_v59, %v856_v55 }
 0x325   : > { %v786_v63 = vadd.f32 %v785_v61, %v778_v60  ;;  %v859_v1 = vrot.slane %v858_v62, 2 }
 0x327   : > { %787 = vst [vmem:[#allocation4] sm:$0x1] %v786_v63  ;;  %v860_v2 = vadd.f32 %v859_v1, %v858_v62 }
 0x329   : > { %v861_v3 = vrot.slane %v860_v2, 1 }
 0x32b   : > { %v862_v5 = vadd.f32 %v861_v3, %v860_v2 }
 0x32d   : > { %v863_v6 = vadd.f32 %v862_v5, %v855_v4 }
 0x32e   : > { %v884_v8 = vld [vmem:[#allocation4] sm:$0x1] }
 0x32f   : > { %864 = vst [vmem:[#allocation4 + $0x1] sm:$0x1] %v863_v6  ;;  %v885_v9 = vmul.f32 0.0625, %v884_v8 }
 0x331   : > { %v886_v10 = vmul.f32 %v885_v9, %v883_v7 }
 0x333   : > { %v888_v11 = vsel %vm887_vm4, %v886_v10, 0.0 }
 0x334   : > { %889 = vadd.xlane.f32.xlu0 %v888_v11 }
 0x336   : > { %v891_v12 = vld [vmem:[#allocation4 + $0x1] sm:$0x1] }
 0x337   : > { %v892_v13 = vmul.f32 0.0625, %v891_v12 }
 0x339   : > { %v893_v14 = vmul.f32 %v892_v13, %v883_v7 }
 0x33b   : > { %v894_v15 = vsel %vm887_vm4, %v893_v14, 0.0 }
 0x33c   : > { %895 = vadd.xlane.f32.xlu0 %v894_v15 }
 0x3bd   : > { %v890_v24 = vpop.xlane.xlu0 %889 }
 0x3c5   : > { %v896_v25 = vpop.xlane.xlu0 %895 }
 0x3c6   : > { %v897_v26 = vmax.f32 %v890_v24, %v896_v25 }
 0x3c8   : > { %v898_v27 = vsub.f32 %v890_v24, %v897_v26  ;;  %v901_v28 = vsub.f32 %v896_v25, %v897_v26 }
 0x3ca   : > { %v899_v29 = vmul.f32 1.442695, %v898_v27  ;;  %v902_v30 = vmul.f32 1.442695, %v901_v28 }
 0x3cc   : > { %1583 = vpow2.f32 %v899_v29 }
 0x3cd   : > { %1585 = vpow2.f32 %v902_v30 }
 0x3d9   : > { %v1584_v31 = vpop.eup %1583 }
 0x3da   : > { %v1586_v32 = vpop.eup %1585 }
 0x3db   : > { %v904_v33 = vadd.f32 %v1586_v32, %v1584_v31 }
 0x3dd   : > { %1587 = vrcp.f32 %v904_v33 }
 0x3ea   : > { %v1588_v38 = vpop.eup %1587 }
 0x3eb   : > { %v906_v0 = vmul.f32 %v1588_v38, %v1584_v31  ;;  %v907_v39 = vmul.f32 %v1588_v38, %v1586_v32 }
 0x3ed   : > { %v932_v44 = vrot.slane %v906_v0, %v931_v37  ;;  %v943_v45 = vrot.slane %v907_v39, %v931_v37  ;;  %v1051_v47 = vsel %vm1050_vm5, %v906_v0, 0.0 }
 0x3ee   : > { %v1053_v48 = vsel %vm1052_vm6, %v907_v39, %v1051_v47 }
 0x3ef   : > { %v933_v49 = vmul.f32 %v1340_v40, %v932_v44  ;;  %v934_v50 = vmul.f32 %v1341_v41, %v932_v44  ;;  %v944_v51 = vmul.f32 %v1344_v42, %v943_v45  ;;  %v945_v52 = vmul.f32 %v1345_v43, %v943_v45  ;;  %1055 = vst.msk [vmem:[%s438_s20] sm:$0x1] %vm1054_vm7, %v1053_v48 }
 0x3f1   : > { %v946_v46 = vadd.f32 %v944_v51, %v933_v49  ;;  %v947_v53 = vadd.f32 %v945_v52, %v934_v50 }
 0x3f3   : > { %v948_v54 = vpack.c.bf16 %v947_v53, %v946_v46 }
 0x3f5   : > { %1447 = vmatmul.mubr.bf16.vlgmr.msra.gmra.mxu0 %v948_v54 }
 0x3f6   : > { %1710 = shalt.err (!%p1707_p4)
}
 0x3f7   : > { %s1711_s30 = scalar_lea.hbm %s1080_s15, 16  ;;  %s1715_s21 = scalar_lea.hbm %s2241_s26, 32 }
 0x3f8   : > { %p1712_p8 = scmp.ne.s32.totalorder %s1080_s15, %s1711_s30  ;;  %p1716_p12 = scmp.lt.s32.totalorder %s1080_s15, %s2241_s26 }
 0x3f9   : > { %p1717_p7 = scmp.lt.s32.totalorder %s1715_s21, %s1711_s30 }
 0x3fa   : > { %p1713_p11 = pnand %p1712_p8, %p2242_p10 }
 0x3fb   : > { %p1718_p2 = por %p1717_p7, %p1716_p12 }
 0x3fc   : > { %p1714_p13 = pneg %p1713_p11 }
 0x3fe   : > { %p1719_p5 = pnand %p1718_p2, %p1714_p13 }
 0x400   : > { %1722 = shalt.err (!%p1719_p5)
}
 0x401   : > { %1464 = dma.vmem_to_hbm [thread:$0]  (%p2242_p10), %s1083_s8, 16, %s1080_s15, %s1057_s6   ;;  %v1294_v55 = vld [vmem:[%s448_s24] ss:$0 sm:$0xff] }
 0x402   : > { %s1828_s7 = smov [#allocation12]   ;;  %p2244_p3 = scmp.eq.s32.totalorder %s1907_s11, 1 }
 0x403   : > { %s1066_s16 = sshll.u32 %s1828_s7, 4  ;;  %s1067_s16 = int_to_ptr.vmem [resolvable:$true] %s1066_s16 }
 0x404   : > { %s1723_s12 = scalar_lea.vmem %s1067_s16, 256  ;;  %p1730_p1 = scmp.lt.s32.totalorder %s1067_s16, %s1067_s16 }
 0x405   : > { %p1724_p10 = scmp.ne.s32.totalorder %s1067_s16, %s1723_s12  ;;  %p1731_p6 = scmp.lt.s32.totalorder %s1723_s12, %s1723_s12 }
 0x407   : > { %p1725_p9 = pnand %p1724_p10, %p2244_p3  ;;  %p1732_p4 = por %p1731_p6, %p1730_p1 }
 0x409   : > { %p1726_p0 = pneg %p1725_p9 }
 0x40b   : > { %p1733_p8 = pnand %p1732_p4, %p1726_p0 }
 0x4b5   : > { %v1037_v56 = vpop.f32.mrf.mxu0 }
 0x4b6   : > { %v1038_v57 = vadd.f32 %v1294_v55, %v1037_v56 }
 0x4b7   : > { %v1448_v58 = vpop.f32.mrf.mxu0 }
 0x4b8   : > { %v1044_v59 = vmax.f32 %v1038_v57, 0.0 }
 0x4b9   : > { %v1040_v60 = vpop.f32.mrf.mxu0 }
 0x4ba   : > { %1046 = vst [vmem:[#allocation12] sm:$0xff] %v1044_v59  ;;  %v1041_v61 = vadd.f32 %v1294_v55, %v1040_v60 }
 0x4bb   : > { %v1449_v62 = vpop.f32.mrf.mxu0 }
 0x4bc   : > { %v1045_v63 = vmax.f32 %v1041_v61, 0.0 }
 0x4be   : > { %1047 = vst [vmem:[#allocation12 + $0x8] sm:$0xff] %v1045_v63 }
 0x4bf   : > { %1736 = shalt.err (!%p1733_p8)
}
 0x4c0   : > { %s1829_s19 = smov 128   ;;  %s1830_s24 = smov 8  }
 0x4c1   : > { %p2245_p11 = pmov %p2244_p3  ;;  %s2246_s6 = sld [smem:[#allocation26_spill]] }
 0x4c2   : > { %p2247_p13 = pmov %p2244_p3 }
 0x4c7   : > { %1463 = dma.vmem_to_hbm [thread:$0]  (%p2245_p11), %s1067_s16, 256, %s2246_s6, [#allocation7], %s1829_s19, %s1829_s19, %s1830_s24  }
 0x4c8   : > { %1784 = dma.done.wait (%p2247_p13), [#allocation7], 256   ;;  %p2248_p12 = pmov %p2244_p3 }
 0x4ca   : > { %1786 = vsyncadd (%p2248_p12), [#allocation7], 4294967040 }
 0x4cb PF: > { %s2249_s27 = sld [smem:[#allocation20_spill]]  ;;  %p2252_p2 = scmp.ge.s32.totalorder %s1813_s10, 2 }
 0x4cc   : > { %s2250_s25 = sld [smem:[#allocation22_spill]] }
 0x4d1   : > { %s1098_s30 = sand.u32 1, %s2249_s27  }
 0x4d2   : > { %p2251_p7 = scmp.ne.s32.totalorder %s2250_s25, 0  ;;  %s1099_s0 = scalar_lea.sflag [#allocation14], %s1098_s30 }
 0x4d4   : > { %p1483_p5 = pnand %p2252_p2, %p2251_p7 }
 0x4d6   : > { %p1484_p10 = pneg %p1483_p5 }
 0x4d8   : > { %1788 = dma.done.wait (%p1484_p10), %s1099_s0, 16  }
 0x4d9   : > { %1790 = vsyncadd (%p1484_p10), %s1099_s0, 4294967280  ;;  %s25_s10 = sadd.s32 1, %s1813_s10   ;;  %s2253_s27 = smov %s1797_s28 }
 0x4da   : > { %p22_p3 = scmp.ge.s32.totalorder %s25_s10, 4   ;;  %s2254_s28 = smov %s1801_s29 }
 0x4db   : > { %s2255_s29 = smov %s1993_s4  ;;  %s2256_s30 = smov %s1809_s9 }
 0x4dc   : > { %s2257_s9 = smov %s2259_s23  ;;  %24 = sbr.rel (!%p22_p3) target bundleno = 13 (0xd), region = 150 }
 0x4e1   :  { %1103 = vsyncpa [#allocation6], 1 }
 0x4e2   :  { %1105 = vsyncpa [#allocation6 + $0x1], 1 }
 0x4e3   :  { %1106 = vsyncpa [#allocation9], 1 }
 0x4e4   :  { %1107 = vsyncpa [#allocation7], 1 }
 0x4e5   :  { %1109 = vsyncpa [#allocation7 + $0x1], 1 }
 0x4e6   :  { %1110 = vsyncpa [#allocation14], 1 }
 0x4e7   :  { %1112 = vsyncpa [#allocation14 + $0x1], 1 }

</bundles_post_ra>
